<compile_context>
chip_gen: v7x
topology: tpu7x:2x2x1
jax: 0.10.0
libtpu: 0.0.40
codegen_flags: <defaults>
</compile_context>

<pallas_src>
import jax
import jax.numpy as jnp
from jax.experimental import pallas as pl
from jax.experimental.pallas import tpu as pltpu


def _round_up(x, m):
    return (x + m - 1) // m * m


def actor_critic_kernel(x_ref, w1_ref, w2_ref, wh_ref, b_ref, out_ref):
    """One batch tile of the fused trunk + (actor_mean | critic) heads.

    x_ref  : (TILE_B, state_dim)            bf16
    w1_ref : (state_dim, hidden)            bf16
    w2_ref : (hidden, hidden)               bf16
    wh_ref : (hidden, head_cols)            bf16  [actor_mean | critic | 0-pad]
    b_ref  : (8, max(hidden, head_cols))    f32   rows 0/1/2 = b1 / b2 / b_head
    out_ref: (TILE_B, head_cols)            f32   lane-dense output slab
    """
    hid = w1_ref.shape[1]
    hc = wh_ref.shape[1]
    b1 = b_ref[0:1, :hid]
    b2 = b_ref[1:2, :hid]
    bh = b_ref[2:3, :hc]

    # shared trunk: Linear -> ReLU -> Linear -> ReLU (bf16 MXU, f32 accumulate)
    x = x_ref[...]
    h1 = jnp.dot(x, w1_ref[...], preferred_element_type=jnp.float32) + b1
    h1 = jnp.maximum(h1, 0.0)
    h2 = jnp.dot(h1.astype(w2_ref.dtype), w2_ref[...],
                 preferred_element_type=jnp.float32) + b2
    h2 = jnp.maximum(h2, 0.0)

    # fused heads: one lane-dense matmul + one unmasked store
    out_ref[...] = (jnp.dot(h2.astype(wh_ref.dtype), wh_ref[...],
                            preferred_element_type=jnp.float32) + bh
                    ).astype(out_ref.dtype)


def actor_critic_forward(state, params, *, tile_b=512):
    """Fused actor-critic forward pass. Returns (action_mean, action_std, value)."""
    B, state_dim = state.shape
    hidden = params["w1"].shape[1]
    action_dim = params["wm"].shape[1]
    head_cols = _round_up(action_dim + 1, 128)      # lane-dense fused head width

    # ---- plain-JAX prep: fuse heads, pack biases, cast matmul operands to bf16
    w_head = jnp.zeros((hidden, head_cols), jnp.float32)
    w_head = w_head.at[:, :action_dim].set(params["wm"])
    w_head = w_head.at[:, action_dim:action_dim + 1].set(params["wc"])

    bias_w = max(hidden, head_cols)
    b_pack = jnp.zeros((8, bias_w), jnp.float32)
    b_pack = b_pack.at[0, :hidden].set(params["b1"].reshape(hidden))
    b_pack = b_pack.at[1, :hidden].set(params["b2"].reshape(hidden))
    b_pack = b_pack.at[2, :action_dim].set(params["bm"].reshape(action_dim))
    b_pack = b_pack.at[2, action_dim].set(params["bc"][0, 0])

    # batch tiling: largest tile <= tile_b, pad B up to a multiple of it
    tb = min(tile_b, _round_up(B, 8))
    Bp = _round_up(B, tb)
    if Bp != B:
        state = jnp.pad(state, ((0, Bp - B), (0, 0)))

    x_bf = state.astype(jnp.bfloat16)
    w1 = params["w1"].astype(jnp.bfloat16)
    w2 = params["w2"].astype(jnp.bfloat16)
    wh = w_head.astype(jnp.bfloat16)

    grid = (Bp // tb,)
    out = pl.pallas_call(
        actor_critic_kernel,
        out_shape=jax.ShapeDtypeStruct((Bp, head_cols), jnp.float32),
        grid=grid,
        in_specs=[
            pl.BlockSpec((tb, state_dim), lambda i: (i, 0)),       # state tile
            pl.BlockSpec((state_dim, hidden), lambda i: (0, 0)),   # w1 (resident)
            pl.BlockSpec((hidden, hidden), lambda i: (0, 0)),      # w2 (resident)
            pl.BlockSpec((hidden, head_cols), lambda i: (0, 0)),   # fused head W
            pl.BlockSpec((8, bias_w), lambda i: (0, 0)),           # packed biases
        ],
        out_specs=pl.BlockSpec((tb, head_cols), lambda i: (i, 0)),
        compiler_params=pltpu.CompilerParams(
            dimension_semantics=("parallel",),     # shard batch across TCs (v7x)
            vmem_limit_bytes=32 << 20,             # safe under v7x's 64 MiB VMEM
        ),
    )(x_bf, w1, w2, wh, b_pack)

    action_mean = out[:B, :action_dim]
    value = out[:B, action_dim:action_dim + 1]
    # batch-independent; hoisted out of the kernel (shape (1, action_dim))
    action_std = jnp.exp(params["log_std"])
    return action_mean, action_std, value


def make_params(key, state_dim, action_dim, hidden=128):
    """Deterministic synthetic parameters (PyTorch uses orthogonal init;
    any deterministic init reproduces the forward-pass semantics)."""
    ks = jax.random.split(key, 4)
    scale = lambda fan_in: 1.0 / jnp.sqrt(jnp.float32(fan_in))
    return {
        "w1": jax.random.normal(ks[0], (state_dim, hidden), jnp.float32) * scale(state_dim),
        "b1": jnp.zeros((1, hidden), jnp.float32),
        "w2": jax.random.normal(ks[1], (hidden, hidden), jnp.float32) * scale(hidden),
        "b2": jnp.zeros((1, hidden), jnp.float32),
        "wm": jax.random.normal(ks[2], (hidden, action_dim), jnp.float32) * 0.01,
        "bm": jnp.zeros((1, action_dim), jnp.float32),
        "wc": jax.random.normal(ks[3], (hidden, 1), jnp.float32) * scale(hidden),
        "bc": jnp.zeros((1, 1), jnp.float32),
        "log_std": jnp.full((1, action_dim), -0.5, jnp.float32),
    }


def reference_forward(state, p):
    """Plain-JAX reference using the same bf16 operands / f32 accumulation."""
    bf = lambda a: a.astype(jnp.bfloat16)
    h1 = jnp.maximum(
        jnp.dot(bf(state), bf(p["w1"]), preferred_element_type=jnp.float32) + p["b1"], 0.0)
    h2 = jnp.maximum(
        jnp.dot(bf(h1), bf(p["w2"]), preferred_element_type=jnp.float32) + p["b2"], 0.0)
    mean = jnp.dot(bf(h2), bf(p["wm"]), preferred_element_type=jnp.float32) + p["bm"]
    value = jnp.dot(bf(h2), bf(p["wc"]), preferred_element_type=jnp.float32) + p["bc"]
    return mean, jnp.exp(p["log_std"]), value


if __name__ == "__main__":
    B, state_dim, action_dim = 8, 8, 4   # small shapes consistent with the module
    key = jax.random.PRNGKey(0)
    k_state, k_params = jax.random.split(key)

    state = jax.random.normal(k_state, (B, state_dim), jnp.float32)
    params = make_params(k_params, state_dim, action_dim)

    mean, std, value = actor_critic_forward(state, params)
    jax.block_until_ready((mean, std, value))

    # correctness check against a plain-JAX reference (same bf16 matmul path)
    r_mean, r_std, r_value = reference_forward(state, params)
    assert mean.shape == (B, action_dim) and std.shape == (1, action_dim) and value.shape == (B, 1)
    assert jnp.allclose(mean, r_mean, atol=2e-3, rtol=2e-3)
    assert jnp.allclose(std, r_std, atol=1e-6)
    assert jnp.allclose(value, r_value, atol=2e-3, rtol=2e-3)

    print("KERNEL_OK")
</pallas_src>

<mosaic_0001>
module attributes {stable_mosaic.version = 11 : i64} {
  func.func @actor_critic_kernel(%arg0: i32, %arg1: memref<8x8xbf16, #tpu.memory_space<vmem>>, %arg2: memref<8x128xbf16, #tpu.memory_space<vmem>>, %arg3: memref<128x128xbf16, #tpu.memory_space<vmem>>, %arg4: memref<128x128xbf16, #tpu.memory_space<vmem>>, %arg5: memref<8x128xf32, #tpu.memory_space<vmem>>, %arg6: memref<8x128xf32, #tpu.memory_space<vmem>>) attributes {dimension_semantics = [#tpu.dimension_semantics<parallel>], iteration_bounds = array<i64: 1>, scalar_prefetch = 0 : i64, scratch_operands = 0 : i64, tpu.core_type = #tpu.core_type<tc>, window_params = [{transform_indices = @transform_0, window_bounds = array<i64: 8, 8>}, {pipeline_mode = #tpu.pipeline_mode<synchronous>, transform_indices = @transform_1, window_bounds = array<i64: 8, 128>}, {pipeline_mode = #tpu.pipeline_mode<synchronous>, transform_indices = @transform_2, window_bounds = array<i64: 128, 128>}, {pipeline_mode = #tpu.pipeline_mode<synchronous>, transform_indices = @transform_3, window_bounds = array<i64: 128, 128>}, {pipeline_mode = #tpu.pipeline_mode<synchronous>, transform_indices = @transform_4, window_bounds = array<i64: 8, 128>}, {transform_indices = @transform_5, window_bounds = array<i64: 8, 128>}]} {
    %c0 = arith.constant 0 : index
    %c0_0 = arith.constant 0 : index
    %0 = vector.load %arg5[%c0, %c0_0] : memref<8x128xf32, #tpu.memory_space<vmem>>, vector<1x128xf32>
    %c1 = arith.constant 1 : index
    %c0_1 = arith.constant 0 : index
    %1 = vector.load %arg5[%c1, %c0_1] : memref<8x128xf32, #tpu.memory_space<vmem>>, vector<1x128xf32>
    %c2 = arith.constant 2 : index
    %c0_2 = arith.constant 0 : index
    %2 = vector.load %arg5[%c2, %c0_2] : memref<8x128xf32, #tpu.memory_space<vmem>>, vector<1x128xf32>
    %c0_3 = arith.constant 0 : index
    %c0_4 = arith.constant 0 : index
    %3 = vector.load %arg1[%c0_3, %c0_4] : memref<8x8xbf16, #tpu.memory_space<vmem>>, vector<8x8xbf16>
    %c0_5 = arith.constant 0 : index
    %c0_6 = arith.constant 0 : index
    %4 = vector.load %arg2[%c0_5, %c0_6] : memref<8x128xbf16, #tpu.memory_space<vmem>>, vector<8x128xbf16>
    %cst = arith.constant dense<0.000000e+00> : vector<8x128xf32>
    %5 = tpu.matmul %3, %4, %cst {dimension_numbers = #tpu.dot_dimension_numbers<[1], [0], [0], [1], [0, 0, 1, 1], [], []>} : vector<8x8xbf16>, vector<8x128xbf16>, vector<8x128xf32> -> vector<8x128xf32>
    %6 = vector.broadcast %0 : vector<1x128xf32> to vector<8x128xf32>
    %7 = arith.addf %5, %6 : vector<8x128xf32>
    %cst_7 = arith.constant 0.000000e+00 : f32
    %8 = vector.broadcast %cst_7 : f32 to vector<8x128xf32>
    %9 = arith.maximumf %7, %8 : vector<8x128xf32>
    %10 = arith.truncf %9 : vector<8x128xf32> to vector<8x128xbf16>
    %c0_8 = arith.constant 0 : index
    %c0_9 = arith.constant 0 : index
    %11 = vector.load %arg3[%c0_8, %c0_9] : memref<128x128xbf16, #tpu.memory_space<vmem>>, vector<128x128xbf16>
    %cst_10 = arith.constant dense<0.000000e+00> : vector<8x128xf32>
    %12 = tpu.matmul %10, %11, %cst_10 {dimension_numbers = #tpu.dot_dimension_numbers<[1], [0], [0], [1], [0, 0, 1, 1], [], []>} : vector<8x128xbf16>, vector<128x128xbf16>, vector<8x128xf32> -> vector<8x128xf32>
    %13 = vector.broadcast %1 : vector<1x128xf32> to vector<8x128xf32>
    %14 = arith.addf %12, %13 : vector<8x128xf32>
    %cst_11 = arith.constant 0.000000e+00 : f32
    %15 = vector.broadcast %cst_11 : f32 to vector<8x128xf32>
    %16 = arith.maximumf %14, %15 : vector<8x128xf32>
    %17 = arith.truncf %16 : vector<8x128xf32> to vector<8x128xbf16>
    %c0_12 = arith.constant 0 : index
    %c0_13 = arith.constant 0 : index
    %18 = vector.load %arg4[%c0_12, %c0_13] : memref<128x128xbf16, #tpu.memory_space<vmem>>, vector<128x128xbf16>
    %cst_14 = arith.constant dense<0.000000e+00> : vector<8x128xf32>
    %19 = tpu.matmul %17, %18, %cst_14 {dimension_numbers = #tpu.dot_dimension_numbers<[1], [0], [0], [1], [0, 0, 1, 1], [], []>} : vector<8x128xbf16>, vector<128x128xbf16>, vector<8x128xf32> -> vector<8x128xf32>
    %20 = vector.broadcast %2 : vector<1x128xf32> to vector<8x128xf32>
    %21 = arith.addf %19, %20 : vector<8x128xf32>
    %c0_15 = arith.constant 0 : index
    %c0_16 = arith.constant 0 : index
    %22 = vector.load %arg6[%c0_15, %c0_16] : memref<8x128xf32, #tpu.memory_space<vmem>>, vector<8x128xf32>
    tpu.vector_store %arg6[%c0_15, %c0_16], %21 {strides = array<i32>} : memref<8x128xf32, #tpu.memory_space<vmem>>, vector<8x128xf32>,
    return
  }
  func.func @transform_0(%arg0: i32) -> (i32, i32) {
    %c0_i32 = arith.constant 0 : i32
    %c0_i32_0 = arith.constant 0 : i32
    return %arg0, %c0_i32 : i32, i32
  }
  func.func @transform_1(%arg0: i32) -> (i32, i32) {
    %c0_i32 = arith.constant 0 : i32
    %c0_i32_0 = arith.constant 0 : i32
    %c0_i32_1 = arith.constant 0 : i32
    return %c0_i32, %c0_i32_0 : i32, i32
  }
  func.func @transform_2(%arg0: i32) -> (i32, i32) {
    %c0_i32 = arith.constant 0 : i32
    %c0_i32_0 = arith.constant 0 : i32
    %c0_i32_1 = arith.constant 0 : i32
    return %c0_i32, %c0_i32_0 : i32, i32
  }
  func.func @transform_3(%arg0: i32) -> (i32, i32) {
    %c0_i32 = arith.constant 0 : i32
    %c0_i32_0 = arith.constant 0 : i32
    %c0_i32_1 = arith.constant 0 : i32
    return %c0_i32, %c0_i32_0 : i32, i32
  }
  func.func @transform_4(%arg0: i32) -> (i32, i32) {
    %c0_i32 = arith.constant 0 : i32
    %c0_i32_0 = arith.constant 0 : i32
    %c0_i32_1 = arith.constant 0 : i32
    return %c0_i32, %c0_i32_0 : i32, i32
  }
  func.func @transform_5(%arg0: i32) -> (i32, i32) {
    %c0_i32 = arith.constant 0 : i32
    %c0_i32_0 = arith.constant 0 : i32
    return %arg0, %c0_i32 : i32, i32
  }
}

</mosaic_0001>

<bundles_post_ra>
// kernel: tpu_custom_call.1
= control target key start
LH: loop header
LB: loop body
LE: loop exit
PB: predicated region body
PF: predicated region fallthrough
CT: control target
= control target key end

     0   :  { %10 = vsyncpa [#allocation3], 0  ;;  %s728_s0 = inlined_call_operand.hbm [shape: bf16[8,8], index: 0, kind: input, shape index: {}]   ;;  %s729_s1 = inlined_call_operand.hbm [shape: bf16[8,128], index: 1, kind: input, shape index: {}]   ;;  %s730_s2 = inlined_call_operand.hbm [shape: bf16[128,128], index: 2, kind: input, shape index: {}]   ;;  %s731_s3 = inlined_call_operand.hbm [shape: bf16[128,128], index: 3, kind: input, shape index: {}]   ;;  %s732_s4 = inlined_call_operand.vmem [shape: f32[8,128], index: 4, kind: input, shape index: {}]   ;;  %s733_s5 = inlined_call_operand.hbm [shape: f32[8,128], index: 5, kind: output, shape index: {}]  }
   0x1   :  { %11 = vsyncpa [#allocation6], 0 }
   0x2   :  { %12 = vsyncpa [#allocation9], 0 }
   0x3   :  { %13 = vsyncpa [#allocation4], 0  ;;  %s597_s18 = smov [#allocation5]   ;;  %s598_s20 = smov [#allocation2]  }
   0x4   :  { %s30_s19 = sshll.u32 %s597_s18, 4  ;;  %s20_s21 = sshll.u32 %s598_s20, 4  ;;  %s31_s19 = int_to_ptr.vmem [resolvable:$true] %s30_s19  ;;  %s21_s21 = int_to_ptr.vmem [resolvable:$true] %s20_s21 }
   0x5   :  { %s479_s24 = scalar_lea.hbm %s729_s1, 64 }
   0x6   :  { %p480_p0 = scmp.ne.s32.totalorder %s729_s1, %s479_s24  ;;  %p483_p1 = scmp.lt.u32.totalorder %s479_s24, %s729_s1 }
   0x8   :  { %p485_p2 = pnand %p483_p1, %p480_p0 }
   0xa   :  { %488 = shalt.err (!%p485_p2)
}
   0xb   :  { %s489_s29 = scalar_lea.vmem %s31_s19, 64  ;;  %p494_p4 = scmp.lt.s32.totalorder %s31_s19, %s31_s19 }
   0xc   :  { %p490_p3 = scmp.ne.s32.totalorder %s31_s19, %s489_s29  ;;  %p495_p5 = scmp.lt.s32.totalorder %s489_s29, %s489_s29 }
   0xe   :  { %p496_p6 = por %p495_p5, %p494_p4 }
  0x10   :  { %p497_p7 = pnand %p496_p6, %p490_p3 }
  0x12   :  { %500 = shalt.err (!%p497_p7)
}
  0x13   :  { %33 = dma.hbm_to_vmem [thread:$0]  %s729_s1, 64, %s31_s19, [#allocation6]  }
  0x14   :  { %s501_s9 = scalar_lea.hbm %s728_s0, 64 }
  0x15   :  { %p502_p8 = scmp.ne.s32.totalorder %s728_s0, %s501_s9  ;;  %p505_p9 = scmp.lt.u32.totalorder %s501_s9, %s728_s0 }
  0x17   :  { %p507_p10 = pnand %p505_p9, %p502_p8 }
  0x19   :  { %510 = shalt.err (!%p507_p10)
}
  0x1a   :  { %s511_s14 = scalar_lea.vmem %s21_s21, 64  ;;  %p516_p12 = scmp.lt.s32.totalorder %s21_s21, %s21_s21 }
  0x1b   :  { %p512_p11 = scmp.ne.s32.totalorder %s21_s21, %s511_s14  ;;  %p517_p13 = scmp.lt.s32.totalorder %s511_s14, %s511_s14 }
  0x1d   :  { %p518_p0 = por %p517_p13, %p516_p12 }
  0x1f   :  { %p519_p1 = pnand %p518_p0, %p512_p11 }
  0x21   :  { %522 = shalt.err (!%p519_p1)
}
  0x22   :  { %23 = dma.hbm_to_vmem [thread:$0]  %s728_s0, 64, %s21_s21, [#allocation3]  }
  0x23   :  { %s599_s16 = smov [#allocation7]   ;;  %s523_s20 = scalar_lea.hbm %s730_s2, 1024 }
  0x24   :  { %s39_s17 = sshll.u32 %s599_s16, 4  ;;  %p524_p2 = scmp.ne.s32.totalorder %s730_s2, %s523_s20  ;;  %s40_s17 = int_to_ptr.vmem [resolvable:$true] %s39_s17 }
  0x25   :  { %p527_p3 = scmp.lt.u32.totalorder %s523_s20, %s730_s2 }
  0x27   :  { %p529_p4 = pnand %p527_p3, %p524_p2 }
  0x29   :  { %532 = shalt.err (!%p529_p4)
}
  0x2a   :  { %s533_s26 = scalar_lea.vmem %s40_s17, 1024  ;;  %p538_p6 = scmp.lt.s32.totalorder %s40_s17, %s40_s17 }
  0x2b   :  { %p534_p5 = scmp.ne.s32.totalorder %s40_s17, %s533_s26  ;;  %p539_p7 = scmp.lt.s32.totalorder %s533_s26, %s533_s26 }
  0x2d   :  { %p540_p8 = por %p539_p7, %p538_p6 }
  0x2f   :  { %p541_p9 = pnand %p540_p8, %p534_p5 }
  0x31   :  { %544 = shalt.err (!%p541_p9)
}
  0x32   :  { %s600_s0 = smov 64   ;;  %s601_s21 = smov 4  }
  0x33   :  { %45 = dma.hbm_to_vmem [thread:$0]  %s730_s2, 1024, %s40_s17, [#allocation6], %s600_s0, %s600_s0, %s601_s21  }
  0x34   :  { %s602_s29 = smov [#allocation8]   ;;  %s545_s8 = scalar_lea.hbm %s731_s3, 1024 }
  0x35   :  { %s51_s30 = sshll.u32 %s602_s29, 4  ;;  %p546_p10 = scmp.ne.s32.totalorder %s731_s3, %s545_s8  ;;  %s52_s30 = int_to_ptr.vmem [resolvable:$true] %s51_s30 }
  0x36   :  { %p549_p11 = scmp.lt.u32.totalorder %s545_s8, %s731_s3 }
  0x38   :  { %p551_p12 = pnand %p549_p11, %p546_p10 }
  0x3a   :  { %554 = shalt.err (!%p551_p12)
}
  0x3b   :  { %s555_s13 = scalar_lea.vmem %s52_s30, 1024  ;;  %p560_p0 = scmp.lt.s32.totalorder %s52_s30, %s52_s30 }
  0x3c   :  { %p556_p13 = scmp.ne.s32.totalorder %s52_s30, %s555_s13  ;;  %p561_p1 = scmp.lt.s32.totalorder %s555_s13, %s555_s13 }
  0x3e   :  { %p562_p2 = por %p561_p1, %p560_p0 }
  0x40   :  { %p563_p3 = pnand %p562_p2, %p556_p13 }
  0x42   :  { %566 = shalt.err (!%p563_p3)
}
  0x43   :  { %57 = dma.hbm_to_vmem [thread:$0]  %s731_s3, 1024, %s52_s30, [#allocation9], %s600_s0, %s600_s0, %s601_s21  }
  0x44   :  { %589 = dma.done.wait [#allocation3], 64  }
  0x45   :  { %590 = vsyncadd [#allocation3], 4294967232 }
  0x46   :  { %591 = dma.done.wait [#allocation6], 1088  }
  0x47   :  { %592 = vsyncadd [#allocation6], 4294966208 }
  0x48   :  { %593 = dma.done.wait [#allocation9], 1024  }
  0x49   :  { %594 = vsyncadd [#allocation9], 4294966272  ;;  %v603_v0 = vmov 0.0   ;;  %vm604_vm0 = vmmov 0   ;;  %vm86_vm1 = vcmask 1043456   ;;  %vm82_vm2 = vcmask 64512  }
  0x4a   :  { %408 = vmatprep.subr.bf16.mxu0 %v603_v0  ;;  %410 = vmatprep.mubr.msk.bf16.mxu0 %vm604_vm0, %v603_v0  ;;  %v77_v1 = vld [vmem:[#allocation5] sm:$0xf]  ;;  %v463_v3 = vld [vmem:[#allocation7] sm:$0xff]   ;;  %v76_v4 = vld [vmem:[#allocation2] sm:$0xf]  ;;  %s605_s19 = smov [#allocation10]  }
  0x4b   :  { %414 = vmatprep.subr.bf16.mxu1 %v603_v0  ;;  %430 = vmatprep.mubr.msk.bf16.mxu1 %vm604_vm0, %v603_v0  ;;  %v88_v2 = vsel %vm86_vm1, %v77_v1, 0  ;;  %v464_v5 = vld [vmem:[#allocation7 + $0x8] sm:$0xff]   ;;  %v465_v6 = vld [vmem:[#allocation7 + $0x10] sm:$0xff]   ;;  %v466_v7 = vld [vmem:[#allocation7 + $0x18] sm:$0xff]   ;;  %s357_s20 = sshll.u32 %s605_s19, 4  ;;  %s358_s20 = int_to_ptr.vmem [resolvable:$true] %s357_s20 }
  0x4c   :  { %409 = vmatpush3.bf16.msra.mxu0 %v88_v2  ;;  %415 = vmatpush3.bf16.msra.mxu1 %v463_v3  ;;  %v467_v8 = vld [vmem:[#allocation7 + $0x20] sm:$0xff]   ;;  %v468_v9 = vld [vmem:[#allocation7 + $0x28] sm:$0xff]   ;;  %v469_v10 = vld [vmem:[#allocation7 + $0x30] sm:$0xff]   ;;  %s567_s22 = scalar_lea.vmem %s358_s20, 128  ;;  %p572_p5 = scmp.lt.s32.totalorder %s358_s20, %s358_s20 }
  0x4d   :  { %434 = vmatprep.subr.bf16.mxu0 %v603_v0  ;;  %416 = vmatprep.subr.bf16.mxu1 %v603_v0  ;;  %v470_v11 = vld [vmem:[#allocation7 + $0x38] sm:$0xff]   ;;  %v471_v12 = vld [vmem:[#allocation8] sm:$0xff]   ;;  %v472_v13 = vld [vmem:[#allocation8 + $0x8] sm:$0xff]   ;;  %p568_p4 = scmp.ne.s32.totalorder %s358_s20, %s567_s22  ;;  %p573_p6 = scmp.lt.s32.totalorder %s567_s22, %s567_s22 }
  0x4e   :  { %v473_v14 = vld [vmem:[#allocation8 + $0x10] sm:$0xff]   ;;  %v474_v15 = vld [vmem:[#allocation8 + $0x18] sm:$0xff]   ;;  %v475_v16 = vld [vmem:[#allocation8 + $0x20] sm:$0xff]  }
  0x4f   :  { %411 = vmatmul.mubr.msk.bf16.vlgmr.msra.gmra.mrb[0].mxu0 %vm82_vm2, %v76_v4  ;;  %v476_v17 = vld [vmem:[#allocation8 + $0x28] sm:$0xff]   ;;  %v368_v18 = vld [vmem:[%s732_s4] ss:$0 sm:$0xff]  ;;  %v478_v27 = vld [vmem:[#allocation8 + $0x38] sm:$0xff]   ;;  %p574_p7 = por %p573_p6, %p572_p5 }
  0x50   :  { %450 = vmatprep.mubr.msk.bf16.mxu0 %vm604_vm0, %v603_v0  ;;  %417 = vmatpush3.bf16.msra.mxu1 %v464_v5  ;;  %v477_v26 = vld [vmem:[#allocation8 + $0x30] sm:$0xff]  }
  0x51   :  { %418 = vmatprep.subr.bf16.mxu1 %v603_v0  ;;  %435 = vmatpush3.bf16.msra.mxu0 %v471_v12  ;;  %v370_v28 = vld [vmem:[%s732_s4 + $0x1] ss:$0 sm:$0xff]  ;;  %v379_v36 = vld [vmem:[%s732_s4 + $0x2] ss:$0 sm:$0xff]  ;;  %p575_p8 = pnand %p574_p7, %p568_p4 }
  0x52   :  { %436 = vmatprep.subr.bf16.mxu0 %v603_v0 }
  0x54   :  { %419 = vmatpush3.bf16.msra.mxu1 %v465_v6 }
  0x55   :  { %420 = vmatprep.subr.bf16.mxu1 %v603_v0  ;;  %437 = vmatpush3.bf16.msra.mxu0 %v472_v13 }
  0x56   :  { %438 = vmatprep.subr.bf16.mxu0 %v603_v0 }
  0x58   :  { %421 = vmatpush3.bf16.msra.mxu1 %v466_v7 }
  0x59   :  { %422 = vmatprep.subr.bf16.mxu1 %v603_v0  ;;  %439 = vmatpush3.bf16.msra.mxu0 %v473_v14 }
  0x5a   :  { %440 = vmatprep.subr.bf16.mxu0 %v603_v0 }
  0x5c   :  { %423 = vmatpush3.bf16.msra.mxu1 %v467_v8 }
  0x5d   :  { %424 = vmatprep.subr.bf16.mxu1 %v603_v0  ;;  %441 = vmatpush3.bf16.msra.mxu0 %v474_v15 }
  0x5e   :  { %442 = vmatprep.subr.bf16.mxu0 %v603_v0 }
  0x60   :  { %425 = vmatpush3.bf16.msra.mxu1 %v468_v9 }
  0x61   :  { %426 = vmatprep.subr.bf16.mxu1 %v603_v0  ;;  %443 = vmatpush3.bf16.msra.mxu0 %v475_v16 }
  0x62   :  { %444 = vmatprep.subr.bf16.mxu0 %v603_v0 }
  0x64   :  { %427 = vmatpush3.bf16.msra.mxu1 %v469_v10 }
  0x65   :  { %428 = vmatprep.subr.bf16.mxu1 %v603_v0  ;;  %445 = vmatpush3.bf16.msra.mxu0 %v476_v17 }
  0x66   :  { %446 = vmatprep.subr.bf16.mxu0 %v603_v0 }
  0x68   :  { %429 = vmatpush3.bf16.msra.mxu1 %v470_v11 }
  0x69   :  { %447 = vmatpush3.bf16.msra.mxu0 %v477_v26 }
  0x6a   :  { %448 = vmatprep.subr.bf16.mxu0 %v603_v0 }
  0x6d   :  { %449 = vmatpush3.bf16.msra.mxu0 %v478_v27 }
 0x122   :  { %v124_v19 = vpop.f32.mrb[0].mxu0 }
 0x123   :  { %v125_v20 = vadd.f32 %v368_v18, %v124_v19  ;;  %v412_v21 = vpop.f32.mrb[1].mxu0 }
 0x124   :  { %v127_v22 = vpop.f32.mrb[2].mxu0 }
 0x125   :  { %v130_v23 = vmax.f32 %v125_v20, 0.0  ;;  %v413_v24 = vpop.f32.mrb[3].mxu0 }
 0x127   :  { %v131_v25 = vpack.c.bf16 %v130_v23, %v130_v23 }
 0x129   :  { %431 = vmatmul.mubr.bf16.vlgmr.msra.gmra.mrb[0].mxu1 %v131_v25 }
 0x1fc   :  { %v234_v29 = vpop.f32.mrb[0].mxu1 }
 0x1fd   :  { %v235_v30 = vadd.f32 %v370_v28, %v234_v29  ;;  %v432_v31 = vpop.f32.mrb[1].mxu1 }
 0x1fe   :  { %v237_v32 = vpop.f32.mrb[2].mxu1 }
 0x1ff   :  { %v240_v33 = vmax.f32 %v235_v30, 0.0  ;;  %v433_v34 = vpop.f32.mrb[3].mxu1 }
 0x201   :  { %v241_v35 = vpack.c.bf16 %v240_v33, %v240_v33 }
 0x203   :  { %451 = vmatmul.mubr.bf16.vlgmr.msra.gmra.mrb[4].mxu0 %v241_v35 }
 0x2d6   :  { %v344_v37 = vpop.f32.mrb[4].mxu0 }
 0x2d7   :  { %v345_v38 = vadd.f32 %v379_v36, %v344_v37  ;;  %v452_v39 = vpop.f32.mrb[5].mxu0 }
 0x2d8   :  { %v347_v40 = vpop.f32.mrb[6].mxu0 }
 0x2d9   :  { %350 = vst [vmem:[#allocation10] sm:$0xff] %v345_v38  ;;  %v453_v41 = vpop.f32.mrb[7].mxu0 }
 0x2da   :  { %578 = shalt.err (!%p575_p8)
}
 0x2db   :  { %s579_s4 = scalar_lea.hbm %s733_s5, 128 }
 0x2dc   :  { %p580_p9 = scmp.ne.s32.totalorder %s733_s5, %s579_s4  ;;  %p583_p10 = scmp.lt.u32.totalorder %s579_s4, %s733_s5 }
 0x2de   :  { %p585_p11 = pnand %p583_p10, %p580_p9 }
 0x2e0   :  { %588 = shalt.err (!%p585_p11)
}
 0x2e1   :  { %360 = dma.vmem_to_hbm [thread:$0]  %s358_s20, 128, %s733_s5, [#allocation4]  }
 0x2e2   :  { %595 = dma.done.wait [#allocation4], 128  }
 0x2e3   :  { %596 = vsyncadd [#allocation4], 4294967168 }
 0x2e4   :  { %364 = vsyncpa [#allocation3], 1 }
 0x2e5   :  { %365 = vsyncpa [#allocation6], 1 }
 0x2e6   :  { %366 = vsyncpa [#allocation9], 1 }
 0x2e7   :  { %367 = vsyncpa [#allocation4], 1 }

</bundles_post_ra>
